<compile_context>
chip_gen: v7x
topology: tpu7x:2x2x1
jax: 0.10.0
libtpu: 0.0.40
codegen_flags: <defaults>
</compile_context>

<pallas_src>
import functools

import jax
import jax.numpy as jnp
from jax.experimental import pallas as pl
from jax.experimental.pallas import tpu as pltpu


# ------------------------------ small helpers ------------------------------

def _cdiv(a, b):
    return -(-a // b)


def _vmem_capacity_bytes():
    try:
        return int(pltpu.get_tpu_info().vmem_capacity_bytes)
    except Exception:
        return 64 << 20  # conservative (v7x per-core VMEM)


def _pick_tile_rows(B, G, HW, target_bytes):
    """Tile rows (leading, un-constrained dim); no divisibility requirement."""
    bytes_per_row = G * HW * 4
    tb = max(1, min(B, int(target_bytes) // bytes_per_row))
    if B >= 2:
        # keep >= 2 grid blocks so both v7x TensorCores get whiten work;
        # one extra grid step (~0.35us) is noise on 1-TC chips.
        tb = min(tb, _cdiv(B, 2))
    return int(tb)


# ----------------------------- Pallas kernels ------------------------------

def _stats_kernel(x_ref, sum_ref, gram_ref, *, total_rows, tile_rows, inner,
                  masked):
    """Fused single-pass statistics.

    x_ref:    (tb, G, HW) tile in the native (N*C, G, H*W) layout.
    sum_ref:  (1, G, 1)   resident accumulator: sum over (b, w) of x.
    gram_ref: (1, G, G)   resident accumulator: raw Gram sum_b x_b @ x_b^T.
    Grid: (parts, inner); axis 0 "parallel" (core partitions), axis 1
    "arbitrary" (reduction over batch tiles).
    """
    i = pl.program_id(1)

    @pl.when(i == 0)
    def _():
        sum_ref[...] = jnp.zeros_like(sum_ref)
        gram_ref[...] = jnp.zeros_like(gram_ref)

    x = x_ref[...]                                        # (tb, G, HW) f32

    if masked:
        # Ragged / overshooting last block: zero rows past the end of the
        # batch so they contribute nothing to the statistics.
        blk = pl.program_id(0) * inner + i
        valid = total_rows - blk * tile_rows
        row = jax.lax.broadcasted_iota(jnp.int32, x.shape, 0)
        x = jnp.where(row < valid, x, 0.0)

    # sum over lanes, then over the batch axis -> (1, G, 1)
    # TODO(synk): on v7x fold this lane reduce (and the (tb,G,G) intermediate
    # below) into a single MXU contraction via an augmented ones-row Gram so
    # the stats pass stays at the 3.2 TB/s roofline.
    s = jnp.sum(x, axis=-1, keepdims=True)                # (tb, G, 1)
    sum_ref[...] += jnp.sum(s, axis=0, keepdims=True)     # (1, G, 1)

    # per-sample Gram on the MXU ('bgd,bhd->bgh'), reduced over the batch axis.
    g = jax.lax.dot_general(
        x, x,
        dimension_numbers=(((2,), (2,)), ((0,), (0,))),
        preferred_element_type=jnp.float32)               # (tb, G, G)
    gram_ref[...] += jnp.sum(g, axis=0, keepdims=True)    # (1, G, G)


def _whiten_vpu_kernel(wm_cols_ref, x_ref, o_ref):
    """out[b,g,w] = sum_h wm[g,h] * x[b,h,w]  (VPU broadcast-MAC, no MXU).

    wm_cols_ref: (G, G, 1) with wm_cols[h, g, 0] = wm[g, h]  (resident, tiny).
    x_ref/o_ref: (tb, G, HW) tiles in native layout.
    K = G is far too small for the MXU push cadence; G broadcasting
    multiply-adds cost ~2G/4 cycles per output vreg on the VPU, below the HBM
    budget per vreg on every generation.
    """
    x = x_ref[...]                                        # (tb, G, HW)
    G = x.shape[1]
    acc = x[:, 0:1, :] * wm_cols_ref[0]                   # (tb,1,HW)*(G,1)->(tb,G,HW)
    for h in range(1, G):
        acc = acc + x[:, h:h + 1, :] * wm_cols_ref[h]
    o_ref[...] = acc


def _whiten_mxu_kernel(wm_ref, x_ref, o_ref):
    """Fallback: batched MXU matmul (correct but MXU-push-bound for small G)."""
    x = x_ref[...]                                        # (tb, G, HW)
    wm = wm_ref[...]                                      # (G, G)
    wm_b = jnp.broadcast_to(wm[None], (x.shape[0],) + wm.shape)
    o_ref[...] = jax.lax.dot_general(
        wm_b, x,
        dimension_numbers=(((2,), (1,)), ((0,), (0,))),
        preferred_element_type=jnp.float32)


# --------------------------- pallas_call wrappers ---------------------------

def compute_stats(x3, tb, parts, vmem_limit):
    """Single fused pass over x3 (B,G,HW): (parts,G,1) sums and (parts,G,G) Grams."""
    B, G, HW = x3.shape
    nb = _cdiv(B, tb)
    inner = _cdiv(nb, parts)
    masked = (parts * inner * tb) != B

    kern = functools.partial(_stats_kernel, total_rows=B, tile_rows=tb,
                             inner=inner, masked=masked)

    return pl.pallas_call(
        kern,
        out_shape=(jax.ShapeDtypeStruct((parts, G, 1), jnp.float32),
                   jax.ShapeDtypeStruct((parts, G, G), jnp.float32)),
        grid_spec=pltpu.PrefetchScalarGridSpec(
            num_scalar_prefetch=0,
            grid=(parts, inner),
            in_specs=[pl.BlockSpec((tb, G, HW),
                                   lambda p, i: (p * inner + i, 0, 0))],
            out_specs=(pl.BlockSpec((1, G, 1), lambda p, i: (p, 0, 0)),
                       pl.BlockSpec((1, G, G), lambda p, i: (p, 0, 0)))),
        compiler_params=pltpu.CompilerParams(
            dimension_semantics=("parallel", "arbitrary"),
            vmem_limit_bytes=int(vmem_limit)),
    )(x3)


def apply_whitening(wm, x3, tb, vmem_limit):
    """x_out3[b] = wm @ x3[b], tiled over the batch axis (divisor-free grid)."""
    B, G, HW = x3.shape
    nb = _cdiv(B, tb)

    cparams = pltpu.CompilerParams(dimension_semantics=("parallel",),
                                   vmem_limit_bytes=int(vmem_limit))
    out_shape = jax.ShapeDtypeStruct((B, G, HW), jnp.float32)
    x_spec = pl.BlockSpec((tb, G, HW), lambda i: (i, 0, 0))
    o_spec = pl.BlockSpec((tb, G, HW), lambda i: (i, 0, 0))

    # wm_cols[h, g, 0] = wm[g, h]  (tiny, computed once in glue)
    wm_cols = jnp.transpose(wm)[:, :, None]

    vpu_call = pl.pallas_call(
        _whiten_vpu_kernel,
        out_shape=out_shape,
        grid_spec=pltpu.PrefetchScalarGridSpec(
            num_scalar_prefetch=0,
            grid=(nb,),
            in_specs=[pl.BlockSpec((G, G, 1), lambda i: (0, 0, 0)),  # resident
                      x_spec],
            out_specs=o_spec),
        compiler_params=cparams)
    try:
        return vpu_call(wm_cols, x3)
    except Exception:
        # TODO(synk): safety net only — the batched-MXU path is correct but
        # MXU-push-bound for K=G; used only if the VPU form fails to lower.
        mxu_call = pl.pallas_call(
            _whiten_mxu_kernel,
            out_shape=out_shape,
            grid_spec=pltpu.PrefetchScalarGridSpec(
                num_scalar_prefetch=0,
                grid=(nb,),
                in_specs=[pl.BlockSpec((G, G), lambda i: (0, 0)),
                          x_spec],
                out_specs=o_spec),
            compiler_params=cparams)
        return mxu_call(wm, x3)


# --------------------------------- module -----------------------------------

class BD:
    """JAX/Pallas port of the PyTorch BD module (training-mode whitening)."""

    def __init__(self, G=10):
        self.momentum = 0.9
        self.G = G
        # TODO(synk): PyTorch sets self.running_wm = None right after
        # registering the eye(G) buffer; we keep the eye(G) init so the
        # eval path / momentum update is well-defined.
        self.running_wm = jnp.eye(G, dtype=jnp.float32)

    def __call__(self, x, T=5, eps=1e-5, training=True, tile_target_bytes=None,
                 stats_partitions=None):
        # NOTE: the reference PyTorch forward never iterates with T (only P[0]
        # is used), so the Cholesky-based wm below matches it exactly.
        N, C, G, H, W = x.shape
        assert G == self.G
        B, HW = N * C, H * W
        m = B * HW

        # Free reshape of the contiguous NCGHW buffer -- no HBM transpose.
        # Statistics / whitening over the G axis are order-invariant in the
        # remaining (N, C, H, W) positions, so this matches the reference
        # x.permute(0,2,1,3,4).transpose(0,1).view(G, -1) math exactly.
        # TODO(synk): if H*W is not a multiple of 128 the output stores are
        # lane-masked; pad HW to 128 upstream for realistic CNN spatial sizes.
        x3 = x.reshape(B, G, HW).astype(jnp.float32)

        # Generation-aware tile / VMEM sizing.
        vmem_cap = _vmem_capacity_bytes()
        if tile_target_bytes is None:
            tile_target_bytes = max(1 << 20, min(8 << 20, vmem_cap // 16))
        tb = _pick_tile_rows(B, G, HW, tile_target_bytes)
        tile_bytes = tb * G * HW * 4
        vmem_limit = int(min(int(vmem_cap * 0.9), max(32 << 20, 5 * tile_bytes)))

        if training:
            nb = _cdiv(B, tb)
            parts = stats_partitions
            if parts is None:
                # v7x: split the reduction across the 2 TensorCores; harmless
                # (a serial loop) on single-TC v5e/v6e.
                parts = 2 if (nb >= 2 and nb % 2 == 0) else 1
            sums, grams = compute_stats(x3, tb, parts, vmem_limit)
            sum_x = jnp.sum(sums, axis=0)                 # (G, 1)
            gram = jnp.sum(grams, axis=0)                 # (G, G)
            mean = sum_x / float(m)
            eye = jnp.eye(G, dtype=jnp.float32)
            # One-pass covariance: E[x x^T] - mean mean^T  (+ eps * I).
            # TODO(synk): mild cancellation risk if |mean| >> std; acceptable
            # for whitening-style activations.
            Sigma = gram / float(m) - mean @ mean.T + eps * eye
            rTr = 1.0 / jnp.trace(Sigma)                  # (Sigma*I).sum().reciprocal()
            Sigma_N = Sigma * rTr
            # Tiny GxG factorization: plain JAX glue (not a Pallas hot path).
            L = jnp.linalg.cholesky(Sigma_N)
            wm = jax.scipy.linalg.solve_triangular(L, eye, lower=True)
            # TODO(synk): eager buffer mutation; return as state for jit-safe training.
            self.running_wm = (self.momentum * self.running_wm
                               + (1.0 - self.momentum) * wm)
        else:
            wm = self.running_wm

        x_out3 = apply_whitening(wm, x3, tb, vmem_limit)  # Pallas, (B, G, HW)
        # Free reshape back to NCGHW -- no HBM transpose.
        return x_out3.reshape(N, C, G, H, W)


# ----------------------------------- main -----------------------------------

if __name__ == "__main__":
    key = jax.random.PRNGKey(0)
    N, C, G, H, W = 2, 4, 8, 16, 16          # m = N*C*H*W = 2048
    x = jax.random.normal(key, (N, C, G, H, W), dtype=jnp.float32)

    bd = BD(G=G)
    # Force a small tile so the demo exercises multi-step stats accumulation,
    # the 2-partition parallel reduction, and a multi-block whiten grid.
    out = bd(x, training=True, tile_target_bytes=16 * 1024)
    out = jax.block_until_ready(out)

    # Pure-JAX reference of the exact PyTorch forward math (two-pass stats).
    x_in = jnp.transpose(x, (2, 0, 1, 3, 4)).reshape(G, -1)
    m = x_in.shape[1]
    mean = jnp.mean(x_in, axis=-1, keepdims=True)
    xc = x_in - mean
    Sigma = xc @ xc.T / m + 1e-5 * jnp.eye(G, dtype=jnp.float32)
    Sigma_N = Sigma / jnp.trace(Sigma)
    L = jnp.linalg.cholesky(Sigma_N)
    wm_ref = jax.scipy.linalg.solve_triangular(
        L, jnp.eye(G, dtype=jnp.float32), lower=True)
    ref = (wm_ref @ x_in).reshape(G, N, C, H, W).transpose(1, 2, 0, 3, 4)

    assert out.shape == (N, C, G, H, W)
    assert out.dtype == jnp.float32
    assert jnp.allclose(out, ref, atol=1e-3, rtol=1e-3)
    print("KERNEL_OK")
</pallas_src>

<mosaic_0001>
module attributes {stable_mosaic.version = 11 : i64} {
  func.func @_stats_kernel(%arg0: i32, %arg1: i32, %arg2: memref<2x8x256xf32, #tpu.memory_space<vmem>>, %arg3: memref<1x8x1xf32, #tpu.memory_space<vmem>>, %arg4: memref<1x8x8xf32, #tpu.memory_space<vmem>>) attributes {dimension_semantics = [#tpu.dimension_semantics<parallel>, #tpu.dimension_semantics<arbitrary>], iteration_bounds = array<i64: 2, 2>, scalar_prefetch = 0 : i64, scratch_operands = 0 : i64, tpu.core_type = #tpu.core_type<tc>, window_params = [{transform_indices = @transform_0, window_bounds = array<i64: 2, 8, 256>}, {transform_indices = @transform_1, window_bounds = array<i64: 1, 8, 1>}, {transform_indices = @transform_2, window_bounds = array<i64: 1, 8, 8>}]} {
    %c0_i32 = arith.constant 0 : i32
    %0 = arith.cmpi eq, %arg1, %c0_i32 : i32
    %1 = arith.extui %0 : i1 to i32
    %c0_i32_0 = arith.constant 0 : i32
    %2 = arith.cmpi ne, %1, %c0_i32_0 : i32
    scf.if %2 {
      %cst_18 = arith.constant 0.000000e+00 : f32
      %17 = vector.broadcast %cst_18 : f32 to vector<1x8x1xf32>
      %c0_19 = arith.constant 0 : index
      %c0_20 = arith.constant 0 : index
      %c0_21 = arith.constant 0 : index
      %18 = vector.load %arg3[%c0_19, %c0_20, %c0_21] : memref<1x8x1xf32, #tpu.memory_space<vmem>>, vector<1x8x1xf32>
      tpu.vector_store %arg3[%c0_19, %c0_20, %c0_21], %17 {strides = array<i32>} : memref<1x8x1xf32, #tpu.memory_space<vmem>>, vector<1x8x1xf32>,
      %cst_22 = arith.constant 0.000000e+00 : f32
      %19 = vector.broadcast %cst_22 : f32 to vector<1x8x8xf32>
      %c0_23 = arith.constant 0 : index
      %c0_24 = arith.constant 0 : index
      %c0_25 = arith.constant 0 : index
      %20 = vector.load %arg4[%c0_23, %c0_24, %c0_25] : memref<1x8x8xf32, #tpu.memory_space<vmem>>, vector<1x8x8xf32>
      tpu.vector_store %arg4[%c0_23, %c0_24, %c0_25], %19 {strides = array<i32>} : memref<1x8x8xf32, #tpu.memory_space<vmem>>, vector<1x8x8xf32>,
    } else {
    }
    %c0 = arith.constant 0 : index
    %c0_1 = arith.constant 0 : index
    %c0_2 = arith.constant 0 : index
    %3 = vector.load %arg2[%c0, %c0_1, %c0_2] : memref<2x8x256xf32, #tpu.memory_space<vmem>>, vector<2x8x256xf32>
    %cst = arith.constant dense<0.000000e+00> : vector<2x8xf32>
    %4 = vector.multi_reduction <add>, %3, %cst [2] : vector<2x8x256xf32> to vector<2x8xf32>
    %5 = vector.shape_cast %4 : vector<2x8xf32> to vector<2x8x1xf32>
    %c0_3 = arith.constant 0 : index
    %c0_4 = arith.constant 0 : index
    %c0_5 = arith.constant 0 : index
    %6 = vector.load %arg3[%c0_3, %c0_4, %c0_5] : memref<1x8x1xf32, #tpu.memory_space<vmem>>, vector<1x8x1xf32>
    %cst_6 = arith.constant dense<0.000000e+00> : vector<8x1xf32>
    %7 = vector.multi_reduction <add>, %5, %cst_6 [0] : vector<2x8x1xf32> to vector<8x1xf32>
    %8 = vector.shape_cast %7 : vector<8x1xf32> to vector<1x8x1xf32>
    %9 = arith.addf %6, %8 : vector<1x8x1xf32>
    %c0_7 = arith.constant 0 : index
    %c0_8 = arith.constant 0 : index
    %c0_9 = arith.constant 0 : index
    %10 = vector.load %arg3[%c0_7, %c0_8, %c0_9] : memref<1x8x1xf32, #tpu.memory_space<vmem>>, vector<1x8x1xf32>
    tpu.vector_store %arg3[%c0_7, %c0_8, %c0_9], %9 {strides = array<i32>} : memref<1x8x1xf32, #tpu.memory_space<vmem>>, vector<1x8x1xf32>,
    %cst_10 = arith.constant dense<0.000000e+00> : vector<2x8x8xf32>
    %11 = tpu.matmul %3, %3, %cst_10 {dimension_numbers = #tpu.dot_dimension_numbers<[2], [2], [1], [1], [0, 0, 0, 1, 1, 1], [0], [0]>} : vector<2x8x256xf32>, vector<2x8x256xf32>, vector<2x8x8xf32> -> vector<2x8x8xf32>
    %c0_11 = arith.constant 0 : index
    %c0_12 = arith.constant 0 : index
    %c0_13 = arith.constant 0 : index
    %12 = vector.load %arg4[%c0_11, %c0_12, %c0_13] : memref<1x8x8xf32, #tpu.memory_space<vmem>>, vector<1x8x8xf32>
    %cst_14 = arith.constant dense<0.000000e+00> : vector<8x8xf32>
    %13 = vector.multi_reduction <add>, %11, %cst_14 [0] : vector<2x8x8xf32> to vector<8x8xf32>
    %14 = vector.shape_cast %13 : vector<8x8xf32> to vector<1x8x8xf32>
    %15 = arith.addf %12, %14 : vector<1x8x8xf32>
    %c0_15 = arith.constant 0 : index
    %c0_16 = arith.constant 0 : index
    %c0_17 = arith.constant 0 : index
    %16 = vector.load %arg4[%c0_15, %c0_16, %c0_17] : memref<1x8x8xf32, #tpu.memory_space<vmem>>, vector<1x8x8xf32>
    tpu.vector_store %arg4[%c0_15, %c0_16, %c0_17], %15 {strides = array<i32>} : memref<1x8x8xf32, #tpu.memory_space<vmem>>, vector<1x8x8xf32>,
    return
  }
  func.func @transform_0(%arg0: i32, %arg1: i32) -> (i32, i32, i32) {
    %c2_i32 = arith.constant 2 : i32
    %0 = arith.muli %arg0, %c2_i32 : i32
    %1 = arith.addi %0, %arg1 : i32
    %c0_i32 = arith.constant 0 : i32
    %c0_i32_0 = arith.constant 0 : i32
    %c0_i32_1 = arith.constant 0 : i32
    return %1, %c0_i32, %c0_i32_0 : i32, i32, i32
  }
  func.func @transform_1(%arg0: i32, %arg1: i32) -> (i32, i32, i32) {
    %c0_i32 = arith.constant 0 : i32
    %c0_i32_0 = arith.constant 0 : i32
    %c0_i32_1 = arith.constant 0 : i32
    return %arg0, %c0_i32, %c0_i32_0 : i32, i32, i32
  }
  func.func @transform_2(%arg0: i32, %arg1: i32) -> (i32, i32, i32) {
    %c0_i32 = arith.constant 0 : i32
    %c0_i32_0 = arith.constant 0 : i32
    %c0_i32_1 = arith.constant 0 : i32
    return %arg0, %c0_i32, %c0_i32_0 : i32, i32, i32
  }
}

</mosaic_0001>

<bundles_post_ra>
// kernel: tpu_custom_call.1
= control target key start
LH: loop header
LB: loop body
LE: loop exit
PB: predicated region body
PF: predicated region fallthrough
CT: control target
= control target key end

     0   :  { %8 = vsyncpa [#allocation3], 0  ;;  %s1038_s0 = inlined_call_operand.hbm [shape: f32[8,8,256], index: 0, kind: input, shape index: {}]   ;;  %s1039_s1 = inlined_call_operand.vmem [shape: f32[2,8,1], index: 1, kind: output, shape index: {0}]   ;;  %s1040_s2 = inlined_call_operand.hbm [shape: f32[2,8,8], index: 2, kind: output, shape index: {1}]  }
   0x1   :  { %10 = vsyncpa [#allocation3 + $0x1], 0 }
   0x2   :  { %11 = vsyncpa [#allocation4], 0 }
   0x3   :  { %13 = vsyncpa [#allocation4 + $0x1], 0  ;;  %s794_s9 = smov 0   ;;  %s796_s10 = smov 0  }
   0x4   :  { %s798_s11 = smov 0   ;;  %s800_s12 = smov 0  }
   0x5   :  { %s802_s13 = smov 0   ;;  %s804_s14 = smov 0  }
   0x6   :  { %s806_s15 = smov 0   ;;  %s808_s16 = smov 0  }
   0x7   :  { %s810_s17 = smov 0   ;;  %s812_s18 = smov 0  }
   0x8   :  { %s814_s19 = smov 0  }
   0x9 LB: > { %s493_s20 = sadd.s32 4294967295, %s772_s19   ;;  %s494_s21 = sadd.s32 4294967294, %s772_s19   ;;  %s772_s19 = sphi %s814_s19, %s19_s19   ;;  %s768_s18 = sphi %s812_s18, %s1058_s18   ;;  %s764_s17 = sphi %s810_s17, %s1057_s17   ;;  %s760_s16 = sphi %s808_s16, %s1056_s16   ;;  %s756_s15 = sphi %s806_s15, %s1055_s15   ;;  %s752_s14 = sphi %s804_s14, %s1054_s14   ;;  %s748_s13 = sphi %s802_s13, %s1053_s13   ;;  %s744_s12 = sphi %s800_s12, %s1052_s12   ;;  %s740_s11 = sphi %s798_s11, %s1051_s11   ;;  %s736_s10 = sphi %s796_s10, %s1050_s10   ;;  %s732_s9 = sphi %s794_s9, %s1049_s9  }
   0xa   : > { %s28_s22 = sadd.s32 1, %s764_s17  ;;  %s31_s23 = sadd.s32 1, %s768_s18 }
   0xb   : > { %p29_p0 = scmp.ge.s32.totalorder %s28_s22, 2  ;;  %s495_s24 = sshll.u32 %s768_s18, 1 }
   0xc   : > { %s853_s25 = sadd.s32 %s764_s17, %s495_s24  ;;  %s42_s26 = sadd.s32 1, %s752_s14 }
   0xd   : > { %s1060_s22 = smov (%p29_p0, %s28_s22), 0  ;;  %s1062_s23 = smov (!%p29_p0, %s31_s23), %s768_s18 }
   0xe   : > { %p49_p1 = scmp.ne.s32.totalorder %s752_s14, %s748_s13  ;;  %p50_p2 = scmp.eq.s32.totalorder %s772_s19, 0 }
   0xf   : > { %p33_p3 = scmp.ge.s32.totalorder %s1062_s23, 2  ;;  %p55_p4 = scmp.ne.s32.totalorder %s748_s13, %s744_s12 }
  0x10   : > { %p863_p5 = por %p50_p2, %p49_p1  ;;  %p56_p6 = scmp.eq.s32.totalorder %s493_s20, 0 }
  0x11   : > { %s1064_s23 = smov (%p33_p3, %s1062_s23), 0  ;;  %s94_s29 = sadd.s32 1, %s740_s11 }
  0x12   : > { %p869_p7 = por %p56_p6, %p55_p4  ;;  %s496_s30 = sshll.u32 %s1064_s23, 1 }
  0x13   : > { %s91_s3 = ssub.s32 %s768_s18, %s1064_s23  ;;  %s38_s4 = sadd.s32 %s496_s30, %s1060_s22 }
  0x14   : > { %p92_p8 = scmp.eq.s32.totalorder %s91_s3, 0  ;;  %s39_s5 = ssub.s32 %s853_s25, %s38_s4 }
  0x15   : > { %p104_p9 = scmp.ne.s32.totalorder %s740_s11, %s736_s10  ;;  %p40_p10 = scmp.eq.s32.totalorder %s39_s5, 0 }
  0x16   : > { %p105_p11 = scmp.eq.s32.totalorder %s493_s20, 3  ;;  %p110_p13 = scmp.ne.s32.totalorder %s736_s10, %s732_s9 }
  0x17   : > { %s882_s6 = scalar_select %p92_p8, %s740_s11, %s94_s29  }
  0x18   : > { %s885_s7 = scalar_select %p40_p10, %s752_s14, %s42_s26  }
  0x19   : > { %p887_p12 = por %p105_p11, %p104_p9  ;;  %p111_p0 = scmp.eq.s32.totalorder %s494_s21, 3 }
  0x1a   : > { %p527_p1 = scmp.lt.s32.totalorder %s772_s19, 4  ;;  %s131_s12 = sand.u32 1, %s752_s14  }
  0x1b   : > { %s1044_s8 = scalar_select %p887_p12, 1, 0 }
  0x1c   : > { %p897_p2 = por %p111_p0, %p110_p13  ;;  %s499_s30 = sshll.u32 %s131_s12, 5 }
  0x1d   : > { %s514_s3 = sshll.u32 %s853_s25, 9  ;;  %s135_s4 = scalar_lea.vmem [#allocation2], %s499_s30 }
  0x1e   : > { %s1045_s24 = scalar_select %p897_p2, 1, 0 }
  0x1f   : > { %s905_s26 = scalar_lea.hbm %s1038_s0, %s514_s3  ;;  %s145_s5 = sshll.u32 %s135_s4, 4  ;;  %s913_s5 = int_to_ptr.vmem [resolvable:$true] %s145_s5 }
  0x20   : > { %p909_p3 = pnand %p527_p1, %p863_p5  ;;  %s915_s25 = scalar_lea.sflag [#allocation3], %s131_s12 }
  0x21   : > { %s620_s20 = scalar_lea.hbm %s905_s26, 512  ;;  %s625_s3 = scalar_lea.hbm %s1038_s0, 2048 }
  0x22   : > { %p621_p4 = scmp.ne.s32.totalorder %s905_s26, %s620_s20  ;;  %p622_p6 = pneg %p909_p3 }
  0x23   : > { %p626_p5 = scmp.lt.u32.totalorder %s905_s26, %s1038_s0  ;;  %p627_p10 = scmp.lt.u32.totalorder %s625_s3, %s620_s20 }
  0x24   : > { %p623_p8 = pnand %p622_p6, %p621_p4  ;;  %p629_p13 = scmp.lt.u32.totalorder %s620_s20, %s905_s26 }
  0x25   : > { %p628_p11 = por %p627_p10, %p626_p5 }
  0x26   : > { %p624_p9 = pneg %p623_p8 }
  0x27   : > { %p630_p0 = por %p629_p13, %p628_p11 }
  0x29   : > { %p631_p1 = pnand %p630_p0, %p624_p9 }
  0x2b   : > { %634 = shalt.err (!%p631_p1)
}
  0x2c   : > { %s635_s12 = scalar_lea.vmem %s913_s5, 512  ;;  %s774_s30 = smov [#allocation2]  }
  0x2d   : > { %p636_p4 = scmp.ne.s32.totalorder %s913_s5, %s635_s12  ;;  %s640_s27 = sshll.u32 %s774_s30, 4  ;;  %s641_s27 = int_to_ptr.vmem [resolvable:$false] %s640_s27 }
  0x2e   : > { %s642_s29 = scalar_lea.vmem %s641_s27, 1024  ;;  %p643_p12 = scmp.lt.s32.totalorder %s913_s5, %s641_s27 }
  0x2f   : > { %p638_p8 = pnand %p636_p4, %p622_p6  ;;  %p644_p5 = scmp.lt.s32.totalorder %s642_s29, %s635_s12 }
  0x31   : > { %p639_p2 = pneg %p638_p8  ;;  %p645_p10 = por %p644_p5, %p643_p12 }
  0x33   : > { %p646_p11 = pnand %p645_p10, %p639_p2 }
  0x35   : > { %649 = shalt.err (!%p646_p11)
}
  0x36   : > { %s775_s20 = smov 256   ;;  %s776_s3 = smov 16  }
  0x37   : > { %522 = dma.hbm_to_vmem [thread:$0]  (!%p909_p3), %s905_s26, 512, %s913_s5, %s915_s25, %s775_s20, %s775_s20, %s776_s3  }
  0x38   : > { %p504_p6 = scmp.ge.s32.totalorder %s772_s19, 1  ;;  %p153_p9 = scmp.lt.s32.totalorder %s772_s19, 5 }
  0x3a   : > { %p154_p13 = pnand %p504_p6, %p153_p9 }
  0x3b   : > { %s159_s4 = sand.u32 (!%p154_p13), 1, %s748_s13  }
  0x3c   : > { %157 = sbr.rel (%p154_p13) target bundleno = 314 (0x13a), region = 24  ;;  %s505_s12 = sshll.u32 (!%p154_p13), %s159_s4, 5 }
  0x3d   : > { %s160_s30 = scalar_lea.sflag (!%p154_p13), [#allocation3], %s159_s4  ;;  %s163_s27 = scalar_lea.vmem (!%p154_p13), [#allocation2], %s505_s12 }
  0x43   : > { %723 = dma.done.wait (%p869_p7), %s160_s30, 512  }
  0x44   : > { %725 = vsyncadd (%p869_p7), %s160_s30, 4294966784  ;;  %s185_s26 = sand.u32 1, %s736_s10   ;;  %p191_p12 = scmp.lt.s32.totalorder %s760_s16, 1 }
  0x45   : > { %s506_s5 = sshll.u32 %s185_s26, 3  ;;  %p508_p2 = scmp.ne.s32.totalorder %s756_s15, 0 }
  0x46   : > { %s192_s21 = scalar_select %p191_p12, %s760_s16, 1 }
  0x47   : > { %s960_s4 = scalar_lea.vmem [#allocation5], %s506_s5  ;;  %198 = sbr.rel (%p508_p2) target bundleno = 78 (0x4e), region = 32  ;;  %vm199_vm0 = vcmask (!%p508_p2), 7168   ;;  %vm201_vm1 = vcmask (!%p508_p2), 64512   ;;  %v777_v0 = vmov (!%p508_p2), 0.0  }
  0x48   : > { %s507_s25 = sshll.u32 %s192_s21, 3  ;;  %202 = vst.msk [vmem:[%s960_s4] sm:$0xff] (!%p508_p2), %vm201_vm1, %v777_v0 }
  0x49   : > { %s958_s3 = scalar_lea.vmem %s1039_s1, %s507_s25 }
  0x4a   : > { %200 = vst.msk [vmem:[%s958_s3] sm:$0xff] (!%p508_p2), %vm199_vm0, %v777_v0 }
  0x4e PF: > { %v204_v1 = vld [vmem:[%s163_s27 + $0x8] sm:$0xff]  ;;  %v206_v2 = vld [vmem:[%s163_s27 + $0x18] sm:$0xff]  ;;  %v203_v3 = vld [vmem:[%s163_s27] sm:$0xff]  ;;  %vm216_vm2 = vcmask 7168   ;;  %vm359_vm3 = vcmask 64512   ;;  %s510_s15 = sshll.u32 %s760_s16, 7 }
  0x4f   : > { %218 = vmatprep.subr.mxu0 %v204_v1  ;;  %288 = vmatprep.subr.mxu1 %v206_v2  ;;  %v205_v4 = vld [vmem:[%s163_s27 + $0x10] sm:$0xff]  ;;  %v207_v5 = vadd.f32 %v204_v1, %v203_v3  ;;  %v358_v14 = vld [vmem:[%s960_s4] sm:$0xff]  ;;  %s386_s28 = sshll.u32 %s960_s4, 4  ;;  %s973_s27 = scalar_lea.hbm %s1040_s2, %s510_s15  ;;  %s975_s28 = int_to_ptr.vmem [resolvable:$true] %s386_s28 }
  0x50   : > { %219 = vmatpush1.xpose.msra.mxu0 %v203_v3  ;;  %289 = vmatpush1.xpose.msra.mxu1 %v205_v4  ;;  %v210_v6 = vadd.f32 %v206_v2, %v205_v4  ;;  %s370_s5 = scalar_lea.sflag [#allocation4], %s185_s26  ;;  %s650_s21 = scalar_lea.vmem %s975_s28, 128 }
  0x51   : > { %282 = vmatprep.mubr.f32.mxu0 %v204_v1  ;;  %352 = vmatprep.mubr.f32.mxu1 %v206_v2  ;;  %v213_v8 = vld [vmem:[%s958_s3] sm:$0xff]  ;;  %p651_p7 = scmp.ne.s32.totalorder %s975_s28, %s650_s21  ;;  %p1047_p3 = scmp.ne.s32.totalorder %s1044_s8, 0 }
  0x52   : > { %208 = vadd.xlane.f32.xlu0 %v207_v5  ;;  %s778_s16 = smov [#allocation5]  }
  0x53   : > { %283 = vmatmul.mubr.f32.vlgmr.msra.gmra.mrb[0].mxu0 %v203_v3  ;;  %353 = vmatmul.mubr.f32.vlgmr.msra.gmra.mrb[0].mxu1 %v205_v4  ;;  %p652_p0 = pnand %p651_p7, %p1047_p3  ;;  %s654_s25 = sshll.u32 %s778_s16, 4  ;;  %s655_s25 = int_to_ptr.vmem [resolvable:$false] %s654_s25 }
  0x54   : > { %s656_s29 = scalar_lea.vmem %s655_s25, 256  ;;  %p657_p4 = scmp.lt.s32.totalorder %s975_s28, %s655_s25 }
  0x55   : > { %p653_p1 = pneg %p652_p0  ;;  %p658_p8 = scmp.lt.s32.totalorder %s656_s29, %s650_s21 }
  0x56   : > { %211 = vadd.xlane.f32.xlu0 %v210_v6 }
  0x57   : > { %p659_p5 = por %p658_p8, %p657_p4 }
  0x59   : > { %p660_p10 = pnand %p659_p5, %p653_p1 }
  0xdf   : > { %v209_v7 = vpop.xlane.xlu0 %208 }
  0xe3   : > { %v212_v9 = vpop.xlane.xlu0 %211 }
  0xe4   : > { %v214_v10 = vadd.f32 %v212_v9, %v209_v7 }
  0xe6   : > { %v215_v11 = vadd.f32 %v214_v10, %v213_v8 }
  0xe8   : > { %217 = vst.msk [vmem:[%s958_s3] sm:$0xff] %vm216_vm2, %v215_v11 }
 0x126   : > { %v284_v12 = vpop.f32.mrb[0].mxu0  ;;  %v354_v13 = vpop.f32.mrb[0].mxu1 }
 0x127   : > { %v360_v15 = vsel %vm359_vm3, %v284_v12, 0.0  ;;  %v361_v16 = vsel %vm359_vm3, %v354_v13, 0.0  ;;  %v286_v17 = vpop.f32.mrb[1].mxu0  ;;  %v356_v18 = vpop.f32.mrb[1].mxu1 }
 0x128   : > { %v362_v19 = vadd.f32 %v361_v16, %v360_v15 }
 0x12a   : > { %v363_v20 = vadd.f32 %v362_v19, %v358_v14 }
 0x12c   : > { %364 = vst.msk [vmem:[%s960_s4] sm:$0xff] %vm359_vm3, %v363_v20 }
 0x12d   : > { %663 = shalt.err (!%p660_p10)
}
 0x12e   : > { %s664_s26 = scalar_lea.hbm %s973_s27, 128  ;;  %s668_s4 = scalar_lea.hbm %s1040_s2, 256 }
 0x12f   : > { %p665_p11 = scmp.ne.s32.totalorder %s973_s27, %s664_s26  ;;  %p669_p13 = scmp.lt.u32.totalorder %s973_s27, %s1040_s2 }
 0x130   : > { %p670_p12 = scmp.lt.u32.totalorder %s668_s4, %s664_s26  ;;  %p672_p7 = scmp.lt.u32.totalorder %s664_s26, %s973_s27 }
 0x131   : > { %p666_p6 = pnand %p665_p11, %p1047_p3 }
 0x132   : > { %p671_p2 = por %p670_p12, %p669_p13 }
 0x133   : > { %p667_p9 = pneg %p666_p6 }
 0x134   : > { %p673_p0 = por %p672_p7, %p671_p2 }
 0x136   : > { %p674_p1 = pnand %p673_p0, %p667_p9 }
 0x138   : > { %677 = shalt.err (!%p674_p1)
}
 0x139   : > { %517 = dma.vmem_to_hbm [thread:$0]  (%p1047_p3), %s975_s28, 128, %s973_s27, %s370_s5  }
 0x13a PF: > { %p528_p4 = scmp.ge.s32.totalorder %s772_s19, 2  ;;  %s405_s30 = sand.u32 1, %s732_s9  }
 0x13b   : > { %p1048_p8 = scmp.ne.s32.totalorder %s1045_s24, 0  ;;  %s406_s21 = scalar_lea.sflag [#allocation4], %s405_s30 }
 0x13d   : > { %p524_p5 = pnand %p528_p4, %p1048_p8 }
 0x13f   : > { %727 = dma.done.wait (!%p524_p5), %s406_s21, 128  }
 0x140   : > { %729 = vsyncadd (!%p524_p5), %s406_s21, 4294967168  ;;  %s19_s19 = sadd.s32 1, %s772_s19   ;;  %s1049_s9 = smov %s736_s10 }
 0x141   : > { %p16_p10 = scmp.ge.s32.totalorder %s19_s19, 6   ;;  %s1050_s10 = smov %s740_s11 }
 0x142   : > { %s1051_s11 = smov %s882_s6  ;;  %s1052_s12 = smov %s748_s13 }
 0x143   : > { %s1053_s13 = smov %s752_s14  ;;  %s1054_s14 = smov %s885_s7 }
 0x144   : > { %s1055_s15 = smov %s764_s17  ;;  %s1056_s16 = smov %s768_s18 }
 0x145   : > { %s1057_s17 = smov %s1060_s22  ;;  %s1058_s18 = smov %s1064_s23 }
 0x146   :  { %18 = sbr.rel (!%p16_p10) target bundleno = 9 (0x9), region = 85 }
 0x14d   :  { %411 = vsyncpa [#allocation3], 1 }
 0x14e   :  { %413 = vsyncpa [#allocation3 + $0x1], 1 }
 0x14f   :  { %414 = vsyncpa [#allocation4], 1 }
 0x150   :  { %416 = vsyncpa [#allocation4 + $0x1], 1 }

</bundles_post_ra>
